<compile_context>
chip_gen: v5e
topology: v5e:2x2
jax: 0.10.0
libtpu: 0.0.40
codegen_flags: <defaults>
</compile_context>

<pallas_src>
import functools

import jax
import jax.numpy as jnp
from jax.experimental import pallas as pl
from jax.experimental.pallas import tpu as pltpu

_LRELU_SLOPE = 0.2  # SmileGAN's LEncoder uses nn.LeakyReLU(0.2)


def _leaky_relu(x, slope=_LRELU_SLOPE):
    return jnp.where(x > 0, x, slope * x)


def _round_up(x, m):
    return ((x + m - 1) // m) * m


def lencoder_kernel(xT_ref,
                    w0_ref, b0_ref,
                    w1_ref, b1_ref,
                    w2_ref, b2_ref,
                    w3_ref, b3_ref,
                    zsmT_ref, zT_ref):
    """Fused MLP: Linear -> (LReLU, Linear) x3 -> softmax, feature-major."""
    h = xT_ref[...]                                        # (nROI, block_b) f32

    # Linear(nROI, nROI)
    h = jnp.dot(w0_ref[...], h, preferred_element_type=jnp.float32) + b0_ref[...]
    # LeakyReLU(0.2) + Linear(nROI, nROI/2)
    h = _leaky_relu(h)
    h = jnp.dot(w1_ref[...], h, preferred_element_type=jnp.float32) + b1_ref[...]
    # LeakyReLU(0.2) + Linear(nROI/2, nROI/4)
    h = _leaky_relu(h)
    h = jnp.dot(w2_ref[...], h, preferred_element_type=jnp.float32) + b2_ref[...]
    # LeakyReLU(0.2) + Linear(nROI/4, nCluster)
    h = _leaky_relu(h)
    z = jnp.dot(w3_ref[...], h, preferred_element_type=jnp.float32) + b3_ref[...]

    zT_ref[...] = z.astype(zT_ref.dtype)                   # (nCluster, block_b)

    # softmax over the cluster axis (dim=1 of (B, nCluster) == axis 0 here).
    # Exact reciprocal: not a bottleneck, keeps rows summing to 1 within 1e-5.
    m = jnp.max(z, axis=0, keepdims=True)
    e = jnp.exp(z - m)
    zsmT_ref[...] = (e * pl.reciprocal(jnp.sum(e, axis=0, keepdims=True))).astype(
        zsmT_ref.dtype)


@functools.partial(jax.jit, static_argnames=("block_b",))
def lencoder_forward(x, params, *, block_b=1024):
    """LEncoder forward. x: (B, nROI) f32. Returns (z_softmax, z), each (B, nCluster)."""
    (w0, b0), (w1, b1), (w2, b2), (w3, b3) = params
    B, nROI = x.shape
    nCluster = w3.shape[1]

    # ---- choose a lane-aligned batch tile (multiple of 128) -----------------
    blk = max(128, (block_b // 128) * 128)
    blk = min(blk, max(128, _round_up(B, 128)))        # don't over-pad tiny B
    n_blocks = pl.cdiv(B, blk)
    if n_blocks == 1 and B > 128:
        # keep >=2 grid steps so dimension_semantics=("parallel",) can use
        # both TensorCores on v7x.
        blk = max(128, _round_up(pl.cdiv(B, 2), 128))
        n_blocks = pl.cdiv(B, blk)
    B_pad = n_blocks * blk

    # ---- feature-major layout: batch on the lane axis ------------------------
    xT = x.T                                           # (nROI, B)
    if B_pad != B:
        xT = jnp.pad(xT, ((0, 0), (0, B_pad - B)))
    # NOTE: on v6e/v7x, streaming xT as bf16 (cast here) halves HBM bytes;
    # kept f32 so results match the f32 PyTorch reference within tight tolerances.

    # weights to (out, in) (PyTorch layout), biases to (out, 1) for  W @ H + b
    kernel_args = []
    for w, b in ((w0, b0), (w1, b1), (w2, b2), (w3, b3)):
        kernel_args.append(w.T)                        # (out, in)
        kernel_args.append(b.reshape(-1, 1))           # (out, 1)

    def xmap(i):
        return (0, i)

    def wmap(i):
        return (0, 0)

    weight_specs = [pl.BlockSpec(a.shape, wmap) for a in kernel_args]

    out_shapes = (
        jax.ShapeDtypeStruct((nCluster, B_pad), jnp.float32),   # z_softmax^T
        jax.ShapeDtypeStruct((nCluster, B_pad), jnp.float32),   # z^T
    )
    out_specs = (
        pl.BlockSpec((nCluster, blk), xmap),
        pl.BlockSpec((nCluster, blk), xmap),
    )

    zsmT, zT = pl.pallas_call(
        lencoder_kernel,
        out_shape=out_shapes,
        grid_spec=pl.GridSpec(
            grid=(n_blocks,),
            in_specs=[pl.BlockSpec((nROI, blk), xmap)] + weight_specs,
            out_specs=out_specs,
        ),
        compiler_params=pltpu.CompilerParams(
            dimension_semantics=("parallel",)),
    )(xT, *kernel_args)

    # back to (B, nCluster), dropping batch padding
    return zsmT[:, :B].T, zT[:, :B].T


def init_params(key, nCluster, nROI):
    """Deterministic parameter init (shapes follow LEncoder.__init__)."""
    dims = [nROI, nROI, nROI // 2, nROI // 4, nCluster]
    params = []
    for i in range(4):
        key, kw, kb = jax.random.split(key, 3)
        fan_in, fan_out = dims[i], dims[i + 1]
        bound = 1.0 / jnp.sqrt(fan_in)
        # weight stored as (in, out) so the reference does x @ W
        w = jax.random.uniform(kw, (fan_in, fan_out), jnp.float32, -bound, bound)
        b = jax.random.uniform(kb, (1, fan_out), jnp.float32, -bound, bound)
        params.append((w, b))
    return params


def reference_forward(x, params):
    (w0, b0), (w1, b1), (w2, b2), (w3, b3) = params
    h = x @ w0 + b0
    h = _leaky_relu(h)
    h = h @ w1 + b1
    h = _leaky_relu(h)
    h = h @ w2 + b2
    h = _leaky_relu(h)
    z = h @ w3 + b3
    return jax.nn.softmax(z, axis=1), z


if __name__ == "__main__":
    nROI = 32
    nCluster = 4
    B = 256  # small, but exercises a 2-step grid (2 lane-aligned batch tiles)

    key = jax.random.PRNGKey(0)
    key, kx = jax.random.split(key)
    x = jax.random.normal(kx, (B, nROI), dtype=jnp.float32)
    params = init_params(key, nCluster, nROI)

    z_softmax, z = lencoder_forward(x, params, block_b=1024)
    jax.block_until_ready((z_softmax, z))

    z_softmax_ref, z_ref = reference_forward(x, params)
    assert z.shape == (B, nCluster) and z_softmax.shape == (B, nCluster)
    assert jnp.allclose(z, z_ref, atol=1e-4, rtol=1e-4)
    assert jnp.allclose(z_softmax, z_softmax_ref, atol=1e-5, rtol=1e-4)

    print("KERNEL_OK")
</pallas_src>

<mosaic_0001>
module attributes {stable_mosaic.version = 11 : i64} {
  func.func @lencoder_kernel(%arg0: i32, %arg1: memref<32x128xf32, #tpu.memory_space<vmem>>, %arg2: memref<32x32xf32, #tpu.memory_space<vmem>>, %arg3: memref<32x1xf32, #tpu.memory_space<vmem>>, %arg4: memref<16x32xf32, #tpu.memory_space<vmem>>, %arg5: memref<16x1xf32, #tpu.memory_space<vmem>>, %arg6: memref<8x16xf32, #tpu.memory_space<vmem>>, %arg7: memref<8x1xf32, #tpu.memory_space<vmem>>, %arg8: memref<4x8xf32, #tpu.memory_space<vmem>>, %arg9: memref<4x1xf32, #tpu.memory_space<vmem>>, %arg10: memref<4x128xf32, #tpu.memory_space<vmem>>, %arg11: memref<4x128xf32, #tpu.memory_space<vmem>>) attributes {dimension_semantics = [#tpu.dimension_semantics<parallel>], iteration_bounds = array<i64: 2>, scalar_prefetch = 0 : i64, scratch_operands = 0 : i64, tpu.core_type = #tpu.core_type<tc>, window_params = [{transform_indices = @transform_0, window_bounds = array<i64: 32, 128>}, {pipeline_mode = #tpu.pipeline_mode<synchronous>, transform_indices = @transform_1, window_bounds = array<i64: 32, 32>}, {pipeline_mode = #tpu.pipeline_mode<synchronous>, transform_indices = @transform_2, window_bounds = array<i64: 32, 1>}, {pipeline_mode = #tpu.pipeline_mode<synchronous>, transform_indices = @transform_3, window_bounds = array<i64: 16, 32>}, {pipeline_mode = #tpu.pipeline_mode<synchronous>, transform_indices = @transform_4, window_bounds = array<i64: 16, 1>}, {pipeline_mode = #tpu.pipeline_mode<synchronous>, transform_indices = @transform_5, window_bounds = array<i64: 8, 16>}, {pipeline_mode = #tpu.pipeline_mode<synchronous>, transform_indices = @transform_6, window_bounds = array<i64: 8, 1>}, {pipeline_mode = #tpu.pipeline_mode<synchronous>, transform_indices = @transform_7, window_bounds = array<i64: 4, 8>}, {pipeline_mode = #tpu.pipeline_mode<synchronous>, transform_indices = @transform_8, window_bounds = array<i64: 4, 1>}, {transform_indices = @transform_9, window_bounds = array<i64: 4, 128>}, {transform_indices = @transform_10, window_bounds = array<i64: 4, 128>}]} {
    %c0 = arith.constant 0 : index
    %c0_0 = arith.constant 0 : index
    %0 = vector.load %arg1[%c0, %c0_0] : memref<32x128xf32, #tpu.memory_space<vmem>>, vector<32x128xf32>
    %c0_1 = arith.constant 0 : index
    %c0_2 = arith.constant 0 : index
    %1 = vector.load %arg2[%c0_1, %c0_2] : memref<32x32xf32, #tpu.memory_space<vmem>>, vector<32x32xf32>
    %cst = arith.constant dense<0.000000e+00> : vector<32x128xf32>
    %2 = tpu.matmul %1, %0, %cst {dimension_numbers = #tpu.dot_dimension_numbers<[1], [0], [0], [1], [0, 0, 1, 1], [], []>} : vector<32x32xf32>, vector<32x128xf32>, vector<32x128xf32> -> vector<32x128xf32>
    %c0_3 = arith.constant 0 : index
    %c0_4 = arith.constant 0 : index
    %3 = vector.load %arg3[%c0_3, %c0_4] : memref<32x1xf32, #tpu.memory_space<vmem>>, vector<32x1xf32>
    %4 = vector.broadcast %3 : vector<32x1xf32> to vector<32x128xf32>
    %5 = arith.addf %2, %4 : vector<32x128xf32>
    %cst_5 = arith.constant 0.000000e+00 : f32
    %6 = vector.broadcast %cst_5 : f32 to vector<32x128xf32>
    %7 = arith.cmpf ogt, %5, %6 : vector<32x128xf32>
    %cst_6 = arith.constant 2.000000e-01 : f32
    %8 = vector.broadcast %cst_6 : f32 to vector<32x128xf32>
    %9 = arith.mulf %8, %5 : vector<32x128xf32>
    %10 = arith.select %7, %5, %9 : vector<32x128xi1>, vector<32x128xf32>
    %c0_7 = arith.constant 0 : index
    %c0_8 = arith.constant 0 : index
    %11 = vector.load %arg4[%c0_7, %c0_8] : memref<16x32xf32, #tpu.memory_space<vmem>>, vector<16x32xf32>
    %cst_9 = arith.constant dense<0.000000e+00> : vector<16x128xf32>
    %12 = tpu.matmul %11, %10, %cst_9 {dimension_numbers = #tpu.dot_dimension_numbers<[1], [0], [0], [1], [0, 0, 1, 1], [], []>} : vector<16x32xf32>, vector<32x128xf32>, vector<16x128xf32> -> vector<16x128xf32>
    %c0_10 = arith.constant 0 : index
    %c0_11 = arith.constant 0 : index
    %13 = vector.load %arg5[%c0_10, %c0_11] : memref<16x1xf32, #tpu.memory_space<vmem>>, vector<16x1xf32>
    %14 = vector.broadcast %13 : vector<16x1xf32> to vector<16x128xf32>
    %15 = arith.addf %12, %14 : vector<16x128xf32>
    %cst_12 = arith.constant 0.000000e+00 : f32
    %16 = vector.broadcast %cst_12 : f32 to vector<16x128xf32>
    %17 = arith.cmpf ogt, %15, %16 : vector<16x128xf32>
    %cst_13 = arith.constant 2.000000e-01 : f32
    %18 = vector.broadcast %cst_13 : f32 to vector<16x128xf32>
    %19 = arith.mulf %18, %15 : vector<16x128xf32>
    %20 = arith.select %17, %15, %19 : vector<16x128xi1>, vector<16x128xf32>
    %c0_14 = arith.constant 0 : index
    %c0_15 = arith.constant 0 : index
    %21 = vector.load %arg6[%c0_14, %c0_15] : memref<8x16xf32, #tpu.memory_space<vmem>>, vector<8x16xf32>
    %cst_16 = arith.constant dense<0.000000e+00> : vector<8x128xf32>
    %22 = tpu.matmul %21, %20, %cst_16 {dimension_numbers = #tpu.dot_dimension_numbers<[1], [0], [0], [1], [0, 0, 1, 1], [], []>} : vector<8x16xf32>, vector<16x128xf32>, vector<8x128xf32> -> vector<8x128xf32>
    %c0_17 = arith.constant 0 : index
    %c0_18 = arith.constant 0 : index
    %23 = vector.load %arg7[%c0_17, %c0_18] : memref<8x1xf32, #tpu.memory_space<vmem>>, vector<8x1xf32>
    %24 = vector.broadcast %23 : vector<8x1xf32> to vector<8x128xf32>
    %25 = arith.addf %22, %24 : vector<8x128xf32>
    %cst_19 = arith.constant 0.000000e+00 : f32
    %26 = vector.broadcast %cst_19 : f32 to vector<8x128xf32>
    %27 = arith.cmpf ogt, %25, %26 : vector<8x128xf32>
    %cst_20 = arith.constant 2.000000e-01 : f32
    %28 = vector.broadcast %cst_20 : f32 to vector<8x128xf32>
    %29 = arith.mulf %28, %25 : vector<8x128xf32>
    %30 = arith.select %27, %25, %29 : vector<8x128xi1>, vector<8x128xf32>
    %c0_21 = arith.constant 0 : index
    %c0_22 = arith.constant 0 : index
    %31 = vector.load %arg8[%c0_21, %c0_22] : memref<4x8xf32, #tpu.memory_space<vmem>>, vector<4x8xf32>
    %cst_23 = arith.constant dense<0.000000e+00> : vector<4x128xf32>
    %32 = tpu.matmul %31, %30, %cst_23 {dimension_numbers = #tpu.dot_dimension_numbers<[1], [0], [0], [1], [0, 0, 1, 1], [], []>} : vector<4x8xf32>, vector<8x128xf32>, vector<4x128xf32> -> vector<4x128xf32>
    %c0_24 = arith.constant 0 : index
    %c0_25 = arith.constant 0 : index
    %33 = vector.load %arg9[%c0_24, %c0_25] : memref<4x1xf32, #tpu.memory_space<vmem>>, vector<4x1xf32>
    %34 = vector.broadcast %33 : vector<4x1xf32> to vector<4x128xf32>
    %35 = arith.addf %32, %34 : vector<4x128xf32>
    %c0_26 = arith.constant 0 : index
    %c0_27 = arith.constant 0 : index
    %36 = vector.load %arg11[%c0_26, %c0_27] : memref<4x128xf32, #tpu.memory_space<vmem>>, vector<4x128xf32>
    tpu.vector_store %arg11[%c0_26, %c0_27], %35 {strides = array<i32>} : memref<4x128xf32, #tpu.memory_space<vmem>>, vector<4x128xf32>,
    %cst_28 = arith.constant dense<0xFF800000> : vector<128xf32>
    %37 = vector.multi_reduction <maximumf>, %35, %cst_28 [0] : vector<4x128xf32> to vector<128xf32>
    %38 = vector.shape_cast %37 : vector<128xf32> to vector<1x128xf32>
    %39 = vector.broadcast %38 : vector<1x128xf32> to vector<4x128xf32>
    %40 = arith.subf %35, %39 : vector<4x128xf32>
    %41 = math.exp %40 : vector<4x128xf32>
    %cst_29 = arith.constant dense<0.000000e+00> : vector<128xf32>
    %42 = vector.multi_reduction <add>, %41, %cst_29 [0] : vector<4x128xf32> to vector<128xf32>
    %43 = vector.shape_cast %42 : vector<128xf32> to vector<1x128xf32>
    %44 = tpu.reciprocal %43 : vector<1x128xf32> -> vector<1x128xf32>
    %45 = vector.broadcast %44 : vector<1x128xf32> to vector<4x128xf32>
    %46 = arith.mulf %41, %45 : vector<4x128xf32>
    %c0_30 = arith.constant 0 : index
    %c0_31 = arith.constant 0 : index
    %47 = vector.load %arg10[%c0_30, %c0_31] : memref<4x128xf32, #tpu.memory_space<vmem>>, vector<4x128xf32>
    tpu.vector_store %arg10[%c0_30, %c0_31], %46 {strides = array<i32>} : memref<4x128xf32, #tpu.memory_space<vmem>>, vector<4x128xf32>,
    return
  }
  func.func @transform_0(%arg0: i32) -> (i32, i32) {
    %c0_i32 = arith.constant 0 : i32
    %c0_i32_0 = arith.constant 0 : i32
    return %c0_i32, %arg0 : i32, i32
  }
  func.func @transform_1(%arg0: i32) -> (i32, i32) {
    %c0_i32 = arith.constant 0 : i32
    %c0_i32_0 = arith.constant 0 : i32
    %c0_i32_1 = arith.constant 0 : i32
    return %c0_i32, %c0_i32_0 : i32, i32
  }
  func.func @transform_2(%arg0: i32) -> (i32, i32) {
    %c0_i32 = arith.constant 0 : i32
    %c0_i32_0 = arith.constant 0 : i32
    %c0_i32_1 = arith.constant 0 : i32
    return %c0_i32, %c0_i32_0 : i32, i32
  }
  func.func @transform_3(%arg0: i32) -> (i32, i32) {
    %c0_i32 = arith.constant 0 : i32
    %c0_i32_0 = arith.constant 0 : i32
    %c0_i32_1 = arith.constant 0 : i32
    return %c0_i32, %c0_i32_0 : i32, i32
  }
  func.func @transform_4(%arg0: i32) -> (i32, i32) {
    %c0_i32 = arith.constant 0 : i32
    %c0_i32_0 = arith.constant 0 : i32
    %c0_i32_1 = arith.constant 0 : i32
    return %c0_i32, %c0_i32_0 : i32, i32
  }
  func.func @transform_5(%arg0: i32) -> (i32, i32) {
    %c0_i32 = arith.constant 0 : i32
    %c0_i32_0 = arith.constant 0 : i32
    %c0_i32_1 = arith.constant 0 : i32
    return %c0_i32, %c0_i32_0 : i32, i32
  }
  func.func @transform_6(%arg0: i32) -> (i32, i32) {
    %c0_i32 = arith.constant 0 : i32
    %c0_i32_0 = arith.constant 0 : i32
    %c0_i32_1 = arith.constant 0 : i32
    return %c0_i32, %c0_i32_0 : i32, i32
  }
  func.func @transform_7(%arg0: i32) -> (i32, i32) {
    %c0_i32 = arith.constant 0 : i32
    %c0_i32_0 = arith.constant 0 : i32
    %c0_i32_1 = arith.constant 0 : i32
    return %c0_i32, %c0_i32_0 : i32, i32
  }
  func.func @transform_8(%arg0: i32) -> (i32, i32) {
    %c0_i32 = arith.constant 0 : i32
    %c0_i32_0 = arith.constant 0 : i32
    %c0_i32_1 = arith.constant 0 : i32
    return %c0_i32, %c0_i32_0 : i32, i32
  }
  func.func @transform_9(%arg0: i32) -> (i32, i32) {
    %c0_i32 = arith.constant 0 : i32
    %c0_i32_0 = arith.constant 0 : i32
    return %c0_i32, %arg0 : i32, i32
  }
  func.func @transform_10(%arg0: i32) -> (i32, i32) {
    %c0_i32 = arith.constant 0 : i32
    %c0_i32_0 = arith.constant 0 : i32
    return %c0_i32, %arg0 : i32, i32
  }
}

</mosaic_0001>

<bundles_post_ra>
// kernel: lencoder_forward.1
= control target key start
LH: loop header
LB: loop body
LE: loop exit
PB: predicated region body
PF: predicated region fallthrough
CT: control target
= control target key end

     0   :  { %s1192_s0 = inlined_call_operand.vmem [shape: f32[32,256], index: 0, kind: input, shape index: {}]   ;;  %s1193_s1 = inlined_call_operand.vmem [shape: f32[32,32], index: 1, kind: input, shape index: {}]   ;;  %s1194_s2 = inlined_call_operand.vmem [shape: f32[32,1], index: 2, kind: input, shape index: {}]   ;;  %s1195_s3 = inlined_call_operand.vmem [shape: f32[16,32], index: 3, kind: input, shape index: {}]   ;;  %s1196_s4 = inlined_call_operand.vmem [shape: f32[16,1], index: 4, kind: input, shape index: {}]   ;;  %s1197_s5 = inlined_call_operand.vmem [shape: f32[8,16], index: 5, kind: input, shape index: {}]   ;;  %s1198_s6 = inlined_call_operand.vmem [shape: f32[8,1], index: 6, kind: input, shape index: {}]   ;;  %s1199_s7 = inlined_call_operand.vmem [shape: f32[4,8], index: 7, kind: input, shape index: {}]   ;;  %s1200_s8 = inlined_call_operand.vmem [shape: f32[4,1], index: 8, kind: input, shape index: {}]   ;;  %s1201_s9 = inlined_call_operand.hbm [shape: f32[4,256], index: 9, kind: output, shape index: {0}]   ;;  %s1202_s10 = inlined_call_operand.hbm [shape: f32[4,256], index: 10, kind: output, shape index: {1}]  }
   0x1   :  { %1204 = sst [smem:[#allocation9_spill]] %s1192_s0 }
   0x2   :  { %16 = vsyncpa [#allocation4], 0 }
   0x3   :  { %18 = vsyncpa [#allocation4 + $0x1], 0 }
   0x4   :  { %19 = vsyncpa [#allocation6], 0 }
   0x5   :  { %21 = vsyncpa [#allocation6 + $0x1], 0  ;;  %s1019_s13 = smov 0   ;;  %s1021_s14 = smov 0  }
   0x6   :  { %s1023_s15 = smov 0   ;;  %s1025_s16 = smov 0  }
   0x7 LB: > { %s783_s17 = sadd.s32 4294967295, %s961_s16   ;;  %s784_s18 = sadd.s32 4294967294, %s961_s16   ;;  %s961_s16 = sphi %s1025_s16, %s1212_s16   ;;  %s957_s15 = sphi %s1023_s15, %s1211_s15   ;;  %s953_s14 = sphi %s1021_s14, %s1210_s14   ;;  %s949_s13 = sphi %s1019_s13, %s1209_s13  }
   0x8   : > { %s1042_s19 = sadd.s32 1, %s961_s16   ;;  %s34_s20 = sadd.s32 1, %s957_s15 }
   0x9   : > { %s31_s21 = ssub.s32 %s961_s16, %s1042_s19  ;;  %p41_p0 = scmp.ne.s32.totalorder %s957_s15, %s953_s14 }
   0xa   : > { %p32_p1 = scmp.eq.s32.totalorder %s31_s21, 0  ;;  %p42_p2 = scmp.eq.s32.totalorder %s961_s16, 0 }
   0xb   : > { %p239_p3 = scmp.eq.s32.totalorder %s783_s17, 1  ;;  %p244_p4 = scmp.ne.s32.totalorder %s953_s14, %s949_s13 }
   0xc   : > { %s1055_s22 = scalar_select %p32_p1, %s957_s15, %s34_s20  }
   0xd   : > { %p43_p5 = por %p42_p2, %p41_p0  ;;  %p1057_p6 = por %p239_p3, %p41_p0 }
   0xe   : > { %p245_p7 = scmp.eq.s32.totalorder %s784_s18, 1  ;;  %p786_p9 = scmp.ge.s32.totalorder %s961_s16, 2 }
  0x10   : > { %p1061_p8 = por %p245_p7, %p244_p4  ;;  %311 = sbr.rel (%p786_p9) target bundleno = 35 (0x23), region = 48 }
  0x15   : > { %314 = sbr.rel (!%p43_p5) target bundleno = 35 (0x23), region = 52  ;;  %s316_s25 = sand.u32 (%p43_p5), 1, %s957_s15  }
  0x16   : > { %s788_s26 = sshll.u32 (%p43_p5), %s961_s16, 3  ;;  %s787_s27 = sshll.u32 (%p43_p5), %s316_s25, 5 }
  0x17   : > { %s1207_s0 = sld [smem:[#allocation9_spill]] (%p43_p5)  ;;  %s318_s11 = scalar_lea.vmem (%p43_p5), [#allocation2], %s787_s27 }
  0x1d   : > { %s320_s30 = scalar_lea.vmem %s1207_s0, %s788_s26 }
  0x1e   : > { %v355_v0 = vld [vmem:[%s320_s30] sm:$0xff]  ;;  %v357_v1 = vld [vmem:[%s320_s30 + $0x10] sm:$0xff] }
  0x1f   : > { %v359_v2 = vld [vmem:[%s320_s30 + $0x20] sm:$0xff]  ;;  %356 = vst [vmem:[%s318_s11] sm:$0xff] %v355_v0  ;;  %v361_v3 = vld [vmem:[%s320_s30 + $0x30] sm:$0xff] }
  0x20   : > { %358 = vst [vmem:[%s318_s11 + $0x8] sm:$0xff] %v357_v1 }
  0x21   : > { %360 = vst [vmem:[%s318_s11 + $0x10] sm:$0xff] %v359_v2 }
  0x22   : > { %362 = vst [vmem:[%s318_s11 + $0x18] sm:$0xff] %v361_v3 }
  0x23 PF: > { %p789_p10 = scmp.ge.s32.totalorder %s961_s16, 1  ;;  %p367_p11 = scmp.lt.s32.totalorder %s961_s16, 3 }
  0x25   : > { %p368_p12 = pnand %p789_p10, %p367_p11 }
  0x26   : > { %s1076_s12 = sand.u32 (!%p368_p12), 1, %s953_s14  }
  0x27   : > { %371 = sbr.rel (%p368_p12) target bundleno = 673 (0x2a1), region = 90  ;;  %s790_s26 = sshll.u32 (!%p368_p12), %s1076_s12, 5 }
  0x28   : > { %s376_s27 = scalar_lea.vmem (!%p368_p12), [#allocation2], %s790_s26  ;;  %s1135_s26 = sshll.u32 (!%p368_p12), %s783_s17, 2 }
  0x29   : > { %s681_s30 = scalar_lea.hbm (!%p368_p12), %s1202_s10, %s1135_s26  ;;  %s657_s17 = scalar_lea.sflag (!%p368_p12), [#allocation6], %s1076_s12 }
  0x2a   : > { %s685_s20 = sshll.u32 (!%p368_p12), %s681_s30, 4  ;;  %s887_s30 = scalar_lea.hbm (!%p368_p12), %s1202_s10, 8  ;;  %s686_s20 = int_to_ptr.hbm [resolvable:$true] %s685_s20 }
  0x2b   : > { %s881_s21 = sshra.s32 (!%p368_p12), %s686_s20, 4  ;;  %s882_s21 = int_to_ptr.hbm [resolvable:$true] %s881_s21 }
  0x2c   : > { %v427_v4 = vld [vmem:[%s1194_s2 + $0x18] sm:$0xff]  ;;  %v425_v5 = vld [vmem:[%s1194_s2 + $0x8] sm:$0xff]  ;;  %v963_v6 = vmov 0   ;;  %v418_v8 = vld [vmem:[%s376_s27 + $0x10] sm:$0xff]  ;;  %vm448_vm0 = vcmask 261120   ;;  %vm558_vm7 = vcmask 130048   ;;  %p888_p2 = scmp.lt.s32.totalorder %s882_s21, %s1202_s10 }
  0x2d   : > { %860 = vset.pattern.permute.xlu0 %v963_v6  ;;  %861 = vset.pattern.permute.xlu1 %v963_v6  ;;  %v419_v7 = vld [vmem:[%s376_s27 + $0x18] sm:$0xff]  ;;  %v417_v9 = vld [vmem:[%s376_s27 + $0x8] sm:$0xff]  ;;  %v416_v10 = vld [vmem:[%s376_s27] sm:$0xff]  ;;  %vm592_vm9 = vcmask 64512   ;;  %s1203_s27 = sshll.u32 %s1076_s12, 2  ;;  %vm617_vm10 = vcmask 1043456  }
  0x2e   : > { %445 = vperm.xlu0 %860, %v427_v4   ;;  %435 = vperm.xlu1 %861, %v425_v5   ;;  %v420_v11 = vld [vmem:[%s1193_s1] sm:$0xff]  ;;  %v422_v12 = vld [vmem:[%s1193_s1 + $0x10] sm:$0xff]  ;;  %v423_v13 = vld [vmem:[%s1193_s1 + $0x18] sm:$0xff]  ;;  %s415_s11 = scalar_lea.vmem [#allocation5], %s1203_s27  ;;  %s883_s25 = scalar_lea.hbm %s882_s21, 4 }
  0x2f   : > { %862 = vset.pattern.permute.xlu2 %v963_v6  ;;  %473 = vmatpush.msra.mxu0 %v419_v7  ;;  %v426_v14 = vld [vmem:[%s1194_s2 + $0x10] sm:$0xff]  ;;  %v424_v15 = vld [vmem:[%s1194_s2] sm:$0xff]  ;;  %v421_v16 = vld [vmem:[%s1193_s1 + $0x8] sm:$0xff]  ;;  %s683_s18 = sshll.u32 %s415_s11, 4  ;;  %p884_p13 = scmp.ne.s32.totalorder %s882_s21, %s883_s25  ;;  %s684_s18 = int_to_ptr.vmem [resolvable:$true] %s683_s18 }
  0x30   : > { %807 = vmatpush.msra.mxu2 %v419_v7  ;;  %808 = vmatpush.msra.mxu3 %v419_v7  ;;  %v552_v17 = vld [vmem:[%s1198_s6] sm:$0xff]  ;;  %v505_v20 = vld [vmem:[%s1196_s4 + $0x8] sm:$0xff]  ;;  %p889_p3 = scmp.lt.s32.totalorder %s887_s30, %s883_s25 }
  0x31   : > { %474 = vmatpush.msra.mxu0 %v418_v8  ;;  %v586_v18 = vld [vmem:[%s1200_s8] sm:$0xf]  ;;  %513 = vperm.xlu2 %862, %v505_v20   ;;  %v503_v42 = vld [vmem:[%s1195_s3 + $0x8] sm:$0xff]  ;;  %p885_p0 = pnand %p884_p13, %p1057_p6 }
  0x32   : > { %809 = vmatpush.msra.mxu2 %v418_v8  ;;  %810 = vmatpush.msra.mxu3 %v418_v8  ;;  %v504_v23 = vld [vmem:[%s1196_s4] sm:$0xff]  ;;  %p890_p4 = por %p889_p3, %p888_p2 }
  0x33   : > { %475 = vmatpush.msra.mxu0 %v417_v9  ;;  %v502_v40 = vld [vmem:[%s1195_s3] sm:$0xff]  ;;  %p886_p1 = pneg %p885_p0 }
  0x34   : > { %811 = vmatpush.msra.mxu2 %v417_v9  ;;  %812 = vmatpush.msra.mxu3 %v417_v9  ;;  %v551_v52 = vld [vmem:[%s1197_s5] sm:$0xff] }
  0x35   : > { %476 = vmatpush.msra.mxu0 %v416_v10  ;;  %v585_v58 = vld [vmem:[%s1199_s7] sm:$0xf]  ;;  %p891_p5 = pnand %p890_p4, %p886_p1 }
  0x36   : > { %813 = vmatpush.msra.mxu2 %v416_v10  ;;  %814 = vmatpush.msra.mxu3 %v416_v10 }
  0x37   : > { %793 = vmatmul.msk.f32.vlgmr.msra.gmra.mxu0 %vm448_vm0, %v420_v11  ;;  %795 = vmatmul.msk.f32.vlgmr.msra.gmra.mxu2 %vm448_vm0, %v422_v12 }
  0x38   : > { %796 = vmatmul.msk.f32.vlgmr.msra.gmra.mxu3 %vm448_vm0, %v423_v13  ;;  %440 = vperm.xlu0 %860, %v426_v14  }
  0x39   : > { %430 = vperm.xlu1 %861, %v424_v15   ;;  %508 = vperm.xlu2 %862, %v504_v23  }
  0x3f   : > { %794 = vmatmul.msk.f32.gmra.mxu0 %vm448_vm0, %v421_v16 }
  0x40   : > { %555 = vperm.xlu0 %860, %v552_v17  }
  0x41   : > { %589 = vperm.xlu1 %861, %v586_v18  }
  0x8b   : > { %v514_v43 = vpop.permute.xlu2 %513 }
  0x93   : > { %v509_v45 = vpop.permute.xlu2 %508 }
  0xa0   : > { %v446_v19 = vpop.permute.xlu0 %445  ;;  %v436_v21 = vpop.permute.xlu1 %435 }
  0xaa   : > { %v441_v24 = vpop.permute.xlu0 %440 }
  0xab   : > { %v431_v30 = vpop.permute.xlu1 %430 }
  0xb2   : > { %v556_v54 = vpop.permute.xlu0 %555 }
  0xb3   : > { %v590_v60 = vpop.permute.xlu1 %589 }
  0xb4   : > { %v478_v22 = vpop.f32.mrf.mxu0 }
  0xb5   : > { %v479_v32 = vadd.f32 %v478_v22, %v431_v30 }
  0xb7   : > { %v494_v38 = vmul.f32 0.2, %v479_v32  ;;  %vm490_vm4 = vcmp.gt.f32.partialorder %v479_v32, 0.0 }
  0xb9   : > { %v498_v41 = vsel %vm490_vm4, %v479_v32, %v494_v38 }
  0xba   : > { %v484_v25 = vpop.f32.mrf.mxu2 }
  0xbb   : > { %v487_v26 = vpop.f32.mrf.mxu3  ;;  %v485_v27 = vadd.f32 %v484_v25, %v441_v24 }
  0xbc   : > { %v488_v28 = vadd.f32 %v487_v26, %v446_v19  ;;  %v481_v29 = vpop.f32.mrf.mxu0 }
  0xbd   : > { %v482_v31 = vadd.f32 %v481_v29, %v436_v21  ;;  %v496_v34 = vmul.f32 0.2, %v485_v27  ;;  %vm492_vm2 = vcmp.gt.f32.partialorder %v485_v27, 0.0 }
  0xbe   : > { %vm493_vm1 = vcmp.gt.f32.partialorder %v488_v28, 0.0  ;;  %v497_v33 = vmul.f32 0.2, %v488_v28 }
  0xbf   : > { %v495_v36 = vmul.f32 0.2, %v482_v31  ;;  %vm491_vm3 = vcmp.gt.f32.partialorder %v482_v31, 0.0  ;;  %v500_v37 = vsel %vm492_vm2, %v485_v27, %v496_v34 }
  0xc0   : > { %v501_v35 = vsel %vm493_vm1, %v488_v28, %v497_v33 }
  0xc1   : > { %534 = vmatpush.msra.mxu1 %v501_v35  ;;  %v499_v39 = vsel %vm491_vm3, %v482_v31, %v495_v36 }
  0xc3   : > { %535 = vmatpush.msra.mxu1 %v500_v37 }
  0xc5   : > { %536 = vmatpush.msra.mxu1 %v499_v39 }
  0xc7   : > { %537 = vmatpush.msra.mxu1 %v498_v41 }
  0xc8   : > { %797 = vmatmul.msk.f32.vlgmr.msra.gmra.mxu1 %vm448_vm0, %v502_v40 }
  0xd0   : > { %798 = vmatmul.msk.f32.gmra.mxu1 %vm448_vm0, %v503_v42 }
 0x145   : > { %v539_v44 = vpop.f32.mrf.mxu1 }
 0x146   : > { %v540_v46 = vadd.f32 %v539_v44, %v509_v45 }
 0x148   : > { %v547_v50 = vmul.f32 0.2, %v540_v46  ;;  %vm545_vm6 = vcmp.gt.f32.partialorder %v540_v46, 0.0 }
 0x14a   : > { %v549_v53 = vsel %vm545_vm6, %v540_v46, %v547_v50 }
 0x14d   : > { %v542_v47 = vpop.f32.mrf.mxu1 }
 0x14e   : > { %v543_v48 = vadd.f32 %v542_v47, %v514_v43 }
 0x150   : > { %vm546_vm5 = vcmp.gt.f32.partialorder %v543_v48, 0.0  ;;  %v548_v49 = vmul.f32 0.2, %v543_v48 }
 0x152   : > { %v550_v51 = vsel %vm546_vm5, %v543_v48, %v548_v49 }
 0x153   : > { %576 = vmatpush.msrb.mxu2 %v550_v51 }
 0x155   : > { %577 = vmatpush.msrb.mxu2 %v549_v53 }
 0x156   : > { %799 = vmatmul.msk.f32.vlgmr.msrb.gmra.mxu2 %vm558_vm7, %v551_v52 }
 0x1d9   : > { %v579_v55 = vpop.f32.mrf.mxu2 }
 0x1da   : > { %v580_v56 = vadd.f32 %v579_v55, %v556_v54 }
 0x1dc   : > { %vm582_vm8 = vcmp.gt.f32.partialorder %v580_v56, 0.0  ;;  %v583_v57 = vmul.f32 0.2, %v580_v56 }
 0x1de   : > { %v584_v59 = vsel %vm582_vm8, %v580_v56, %v583_v57 }
 0x1df   : > { %611 = vmatpush.msrb.mxu3 %v584_v59 }
 0x1e0   : > { %800 = vmatmul.msk.f32.vlgmr.msrb.gmra.mxu3 %vm592_vm9, %v585_v58 }
 0x263   : > { %v613_v61 = vpop.f32.mrf.mxu3 }
 0x264   : > { %v614_v62 = vadd.f32 %v613_v61, %v590_v60 }
 0x266   : > { %v618_v63 = vsel %vm617_vm10, %v614_v62, -inf  ;;  %616 = vst [vmem:[%s415_s11] sm:$0xf] %v614_v62 }
 0x267   : > { %v619_v0 = vrot.slane %v618_v63, 4 }
 0x268   : > { %894 = shalt.err (!%p891_p5)
}
 0x269   : > { %816 = dma.vmem_to_hbm [thread:$0]  (%p1057_p6), %s684_s18, 64, %s686_s20, %s657_s17   ;;  %v620_v1 = vmax.f32 %v618_v63, %v619_v0 }
 0x26a   : > { %s667_s11 = scalar_lea.hbm %s1201_s9, %s1135_s26  ;;  %s1208_s18 = sshll.u32 %s1076_s12, 2 }
 0x26b   : > { %v621_v2 = vrot.slane %v620_v1, 2  ;;  %s408_s20 = scalar_lea.vmem [#allocation3], %s1208_s18  ;;  %s671_s21 = sshll.u32 %s667_s11, 4  ;;  %s672_s21 = int_to_ptr.hbm [resolvable:$true] %s671_s21 }
 0x26c   : > { %s669_s17 = sshll.u32 %s408_s20, 4  ;;  %s652_s25 = scalar_lea.sflag [#allocation4], %s1076_s12  ;;  %s670_s17 = int_to_ptr.vmem [resolvable:$true] %s669_s17 }
 0x26d   : > { %v622_v3 = vmax.f32 %v620_v1, %v621_v2  ;;  %s909_s28 = sshra.s32 %s672_s21, 4  ;;  %s915_s0 = scalar_lea.hbm %s1201_s9, 8  ;;  %s910_s28 = int_to_ptr.hbm [resolvable:$true] %s909_s28 }
 0x26e   : > { %s911_s26 = scalar_lea.hbm %s910_s28, 4  ;;  %p916_p12 = scmp.lt.s32.totalorder %s910_s28, %s1201_s9 }
 0x26f   : > { %v623_v4 = vrot.slane %v622_v3, 1  ;;  %p912_p7 = scmp.ne.s32.totalorder %s910_s28, %s911_s26  ;;  %p917_p13 = scmp.lt.s32.totalorder %s915_s0, %s911_s26 }
 0x271   : > { %v624_v5 = vmax.f32 %v622_v3, %v623_v4  ;;  %p913_p10 = pnand %p912_p7, %p1057_p6  ;;  %p918_p0 = por %p917_p13, %p916_p12 }
 0x273   : > { %v625_v6 = vsub.f32 %v614_v62, %v624_v5  ;;  %p914_p11 = pneg %p913_p10 }
 0x275   : > { %v626_v7 = vmul.f32 1.442695, %v625_v6  ;;  %p919_p1 = pnand %p918_p0, %p914_p11 }
 0x277   : > { %863 = vpow2.f32 %v626_v7 }
 0x27d   : > { %v864_v8 = vpop.eup %863 }
 0x27e   : > { %v628_v9 = vsel %vm617_vm10, %v864_v8, 0.0 }
 0x27f   : > { %v629_v10 = vrot.slane %v628_v9, 4 }
 0x281   : > { %v630_v11 = vadd.f32 %v629_v10, %v628_v9 }
 0x283   : > { %v631_v12 = vrot.slane %v630_v11, 2 }
 0x285   : > { %v632_v13 = vadd.f32 %v631_v12, %v630_v11 }
 0x287   : > { %v633_v14 = vrot.slane %v632_v13, 1 }
 0x289   : > { %v634_v15 = vadd.f32 %v633_v14, %v632_v13 }
 0x28b   : > { %865 = vrcp.f32 %v634_v15  ;;  %v646_v19 = vand.u32 2147483648, %v634_v15  ;;  %v644_v21 = vand.u32 2147483647, %v634_v15  ;;  %vm640_vm12 = vweird.f32 %v634_v15 }
 0x28d   : > { %v647_v23 = vor.u32 1.1754944e-38, %v646_v19  ;;  %vm645_vm14 = vcmp.eq.f32.partialorder %v644_v21, 8.507059e+37 }
 0x291   : > { %v866_v16 = vpop.eup %865 }
 0x292   : > { %v636_v17 = vmul.f32 %v866_v16, %v634_v15  ;;  %vm641_vm11 = vweird.f32 %v866_v16 }
 0x293   : > { %vm642_vm13 = vmor %vm640_vm12, %vm641_vm11 }
 0x294   : > { %v637_v18 = vsub.f32 1.0, %v636_v17 }
 0x296   : > { %v638_v20 = vmul.f32 %v866_v16, %v637_v18 }
 0x298   : > { %v639_v22 = vadd.f32 %v866_v16, %v638_v20 }
 0x29a   : > { %v643_v24 = vsel %vm642_vm13, %v866_v16, %v639_v22 }
 0x29b   : > { %v648_v25 = vsel %vm645_vm14, %v647_v23, %v643_v24 }
 0x29c   : > { %v649_v26 = vmul.f32 %v864_v8, %v648_v25 }
 0x29e   : > { %650 = vst [vmem:[%s408_s20] sm:$0xf] %v649_v26 }
 0x29f   : > { %922 = shalt.err (!%p919_p1)
}
 0x2a0   : > { %815 = dma.vmem_to_hbm [thread:$0]  (%p1057_p6), %s670_s17, 64, %s672_s21, %s652_s25  }
 0x2a1 PF: > { %s697_s12 = sand.u32 1, %s949_s13   ;;  %p820_p2 = pnand %p786_p9, %p1061_p8 }
 0x2a2   : > { %s698_s18 = scalar_lea.sflag [#allocation4], %s697_s12 }
 0x2a3   : > { %p821_p3 = pneg %p820_p2 }
 0x2a5   : > { %940 = dma.done.wait (%p821_p3), %s698_s18, 64  }
 0x2a6   : > { %942 = vsyncadd (%p821_p3), %s698_s18, 4294967232  ;;  %s708_s20 = scalar_lea.sflag [#allocation6], %s697_s12 }
 0x2a7   : > { %944 = dma.done.wait (%p821_p3), %s708_s20, 64  }
 0x2a8   : > { %946 = vsyncadd (%p821_p3), %s708_s20, 4294967232  ;;  %p24_p6 = scmp.ge.s32.totalorder %s1042_s19, 4   ;;  %s1209_s13 = smov %s953_s14 }
 0x2a9   : > { %s1210_s14 = smov %s957_s15  ;;  %s1211_s15 = smov %s1055_s22 }
 0x2aa   : > { %s1212_s16 = smov %s1042_s19  ;;  %26 = sbr.rel (!%p24_p6) target bundleno = 7 (0x7), region = 151 }
 0x2af   :  { %714 = vsyncpa [#allocation4], 1 }
 0x2b0   :  { %716 = vsyncpa [#allocation4 + $0x1], 1 }
 0x2b1   :  { %717 = vsyncpa [#allocation6], 1 }
 0x2b2   :  { %719 = vsyncpa [#allocation6 + $0x1], 1 }

</bundles_post_ra>
